<compile_context>
chip_gen: v7x
topology: tpu7x:2x2x1
jax: 0.10.0
libtpu: 0.0.40
codegen_flags: <defaults>
</compile_context>

<pallas_src>
import functools

import jax
import jax.numpy as jnp
from jax.experimental import pallas as pl
from jax.experimental.pallas import tpu as pltpu

GAMMA = 0.999
N_FEATURES = 6


def _reward_er_kernel(w_ref, tablev_ref, phi_ref, idx_ref, out_ref, *,
                      n_feat, xy_pad, rw, v_stw, v_s0w, inv_temp):
    """Linear reward head + temperature-softmax value estimate + preference logits.

    All refs are lane-dense (last dim = batch tile). The successor-value gather is a
    one-hot MXU matmul against the pre-dotted table; the 6-wide reward dot is unrolled
    VPU FMAs; the n_succ softmax uses sublane (XLU) reductions.
    """
    bt = out_ref.shape[-1]
    f32 = jnp.float32

    # --- reward head: pr = <w, phi_feats> per side (w scalars hoisted from SMEM once) ---
    w = [w_ref[f] for f in range(n_feat)]

    def lin_rows(base):
        acc = phi_ref[base:base + 1, :] * w[0]
        for f in range(1, n_feat):
            acc = acc + phi_ref[base + f:base + f + 1, :] * w[f]
        return acc                                                    # (1, bt)

    pr_l = lin_rows(0)
    pr_r = lin_rows(n_feat)

    # --- successor values: one-hot gather from pre-dotted table on the (idle) MXU ---
    table = tablev_ref[...]                                           # (n_succ, xy_pad)
    # Shared sublane iota, built once per grid step for all four gathers.
    row_iota = jax.lax.broadcasted_iota(jnp.int32, (xy_pad, bt), 0)

    def soft_value(row):
        # v_pi ~= sum_n softmax(vs / T)[n] * vs[n]  (matches torch.nn.Softmax(dim=1)).
        onehot = (row_iota == idx_ref[row:row + 1, :]).astype(f32)    # (xy_pad, bt)  VPU
        vs = jnp.dot(table, onehot, preferred_element_type=f32)       # (n_succ, bt)  MXU
        zs = vs * inv_temp
        m = jnp.max(zs, axis=0, keepdims=True)                        # (1, bt)  XLU
        e = jnp.exp(zs - m)                                           # EUP
        denom = jnp.sum(e, axis=0, keepdims=True)
        num = jnp.sum(e * vs, axis=0, keepdims=True)
        # EUP approx reciprocal + one Newton step on the VPU ~= exact divide (denom >= 1).
        r = pl.reciprocal(denom, approx=True)
        r = r * (2.0 - denom * r)
        return num * r                                                # (1, bt)

    v_ss_l = soft_value(0)
    v_ss_r = soft_value(1)
    v_es_l = soft_value(2)
    v_es_r = soft_value(3)

    # delta_er = rw*pr + v_stw*v_es - v_s0w*v_ss, per side.
    d_l = rw * pr_l + v_stw * v_es_l - v_s0w * v_ss_l
    d_r = rw * pr_r + v_stw * v_es_r - v_s0w * v_ss_r

    # Single sigmoid; sigmoid(-x) = 1 - sigmoid(x). One lane-dense (2, bt) store.
    p = jax.nn.sigmoid(d_l - d_r)
    out_ref[...] = jnp.concatenate([p, 1.0 - p], axis=0)


def _pick_batch_tile(b):
    """Pick (padded_batch, batch_tile), both multiples of 128 lanes.

    Tiles are as large as possible (up to 4096 lanes) to amortize the ~0.35 us per-grid-step
    pipeline overhead, but whenever there are >= 2 lane tiles of work we keep >= 2 grid
    steps so dimension_semantics=("parallel",) can shard across v7x's two TensorCores.
    Per-step VMEM is tiny ((2F+4+2)*4B*bt, < 1 MiB double-buffered at bt=4096), so VMEM is
    never the constraint on any generation.
    """
    lane = 128
    max_tile = 4096
    b_pad = -(-b // lane) * lane
    if b_pad <= lane:                                    # single 128-lane tile
        return b_pad, b_pad
    bt = min(max_tile, -(-(b_pad // 2) // lane) * lane)  # >= 2 steps, <= max_tile
    b_pad = -(-b_pad // bt) * bt                         # re-pad so the grid divides evenly
    return b_pad, bt


class RewardFunctionERPallas:
    """JAX/Pallas port of prefrence_predicting.reward_learning.RewardFunctionER (forward only)."""

    def __init__(self, gamma, succ_feats, preference_weights, n_features=6):
        self.GAMMA = gamma
        self.n_features = n_features
        self.T = 0.001
        # succ_feats: (n_succ, X, Y, n_features)
        self.succ_feats = jnp.asarray(succ_feats, dtype=jnp.float32)
        self.n_succ, self.GX, self.GY = self.succ_feats.shape[0:3]
        # Deterministic init of nn.Linear(n_features, 1, bias=False) weight, shape (1, n_features).
        bound = 1.0 / (n_features ** 0.5)
        self.w = jax.random.uniform(jax.random.PRNGKey(42), (1, n_features),
                                    jnp.float32, -bound, bound)
        if preference_weights is not None:
            self.rw = float(preference_weights[0][0])
            self.v_stw = float(preference_weights[0][1])
            self.v_s0w = float(preference_weights[0][2])
        else:
            self.rw = self.v_stw = self.v_s0w = 1.0

    def __call__(self, phi):
        # phi: (B, 2, 10) float32; cols 0:6 features, 6,7 start coords, 8,9 end coords.
        phi = jnp.asarray(phi, dtype=jnp.float32)
        B = phi.shape[0]
        F = self.n_features

        # Side-major, lane-dense feature slab: (2, F, B) -> (2F, B); row = s*F + f.
        phi_feats = jnp.transpose(phi[:, :, 0:F], (1, 2, 0)).reshape(2 * F, B)

        # Flattened successor-table indices, lane-dense (4, B):
        # rows = [start-left, start-right, end-left, end-right].
        # TODO(synk): int32 truncation matches torch .long() only for non-negative coords, and
        # JAX/TPU clamps out-of-range indices where torch would raise.
        coords = jnp.transpose(phi[:, :, F:F + 4], (1, 2, 0)).astype(jnp.int32)   # (2, 4, B)
        idx_ss = coords[:, 0] * self.GY + coords[:, 1]                            # (2, B)
        idx_es = coords[:, 2] * self.GY + coords[:, 3]                            # (2, B)
        idx = jnp.concatenate([idx_ss, idx_es], axis=0)                           # (4, B)

        # Pre-dot the tiny successor table with the linear weight (exact: vs is linear in the
        # features). The kernel then gathers n_succ scalars per (side, state) with a one-hot
        # MXU matmul instead of re-reading a pre-gathered (2*n_succ*F, B) slab from HBM.
        w = self.w[0]                                                             # (F,)
        table_v = jnp.einsum("nxyf,f->nxy", self.succ_feats, w).reshape(self.n_succ, -1)
        xy = table_v.shape[1]
        xy_pad = -(-xy // 8) * 8          # sublane-align only (one-hot VPU cost ∝ xy_pad)
        if xy_pad != xy:
            table_v = jnp.pad(table_v, ((0, 0), (0, xy_pad - xy)))

        # Pad the lane (batch) axis; zero lanes are harmless and sliced off afterwards.
        b_pad, bt = _pick_batch_tile(B)
        pad = b_pad - B
        if pad:
            phi_feats = jnp.pad(phi_feats, ((0, 0), (0, pad)))
            idx = jnp.pad(idx, ((0, 0), (0, pad)))

        kernel = functools.partial(
            _reward_er_kernel, n_feat=F, xy_pad=xy_pad,
            rw=self.rw, v_stw=self.v_stw, v_s0w=self.v_s0w, inv_temp=1.0 / self.T)

        out = pl.pallas_call(
            kernel,
            out_shape=jax.ShapeDtypeStruct((2, b_pad), jnp.float32),
            grid=(b_pad // bt,),
            in_specs=[
                pl.BlockSpec(memory_space=pltpu.MemorySpace.SMEM),        # w: (F,) scalars
                pl.BlockSpec((self.n_succ, xy_pad), lambda i: (0, 0)),    # pre-dotted table
                pl.BlockSpec((2 * F, bt), lambda i: (0, i)),              # phi feature rows
                pl.BlockSpec((4, bt), lambda i: (0, i)),                  # flattened coords
            ],
            out_specs=pl.BlockSpec((2, bt), lambda i: (0, i)),
            compiler_params=pltpu.CompilerParams(
                dimension_semantics=("parallel",)),
        )(w, table_v, phi_feats, idx)

        out = out[:, :B]                                  # (2, B)
        # torch.stack([left_pred, right_pred], axis=1) with (B,1) operands -> (B, 2, 1)
        return jnp.transpose(out, (1, 0))[:, :, None]


def reference_forward(model, phi):
    """Pure-JAX re-implementation of the PyTorch forward, for verification."""
    phi = jnp.asarray(phi, dtype=jnp.float32)
    w = model.w[0]                                            # (6,)
    pr = jnp.einsum("bsf,f->bs", phi[:, :, 0:6], w)           # (B, 2)

    def get_vals(xcol, ycol):
        x = phi[:, :, xcol].astype(jnp.int32)
        y = phi[:, :, ycol].astype(jnp.int32)
        feats = model.succ_feats[:, x, y, :]                  # (n_succ, B, 2, 6)
        vs = jnp.einsum("nbsf,f->bns", feats, w)              # (B, n_succ, 2)
        p = jax.nn.softmax(vs / model.T, axis=1)
        return jnp.sum(p * vs, axis=1)                        # (B, 2)

    v_ss = get_vals(6, 7)
    v_es = get_vals(8, 9)
    left = model.rw * pr[:, 0:1] + model.v_stw * v_es[:, 0:1] - model.v_s0w * v_ss[:, 0:1]
    right = model.rw * pr[:, 1:2] + model.v_stw * v_es[:, 1:2] - model.v_s0w * v_ss[:, 1:2]
    left_pred = jax.nn.sigmoid(left - right)
    right_pred = jax.nn.sigmoid(right - left)
    return jnp.stack([left_pred, right_pred], axis=1)         # (B, 2, 1)


if __name__ == "__main__":
    key = jax.random.PRNGKey(0)
    B, n_succ, GX, GY = 8, 4, 5, 5
    k1, k2, k3 = jax.random.split(key, 3)

    succ_feats = jax.random.normal(k1, (n_succ, GX, GY, N_FEATURES), jnp.float32)
    traj_feats = jax.random.normal(k2, (B, 2, N_FEATURES), jnp.float32)
    coords = jax.random.randint(k3, (B, 2, 4), 0, GX).astype(jnp.float32)
    phi = jnp.concatenate([traj_feats, coords], axis=-1)      # (B, 2, 10)

    preference_weights = [[1.5, 0.8, 1.2]]
    model = RewardFunctionERPallas(GAMMA, succ_feats, preference_weights,
                                   n_features=N_FEATURES)

    out = model(phi)
    out = jax.block_until_ready(out)

    ref = reference_forward(model, phi)
    assert out.shape == (B, 2, 1), out.shape
    assert jnp.allclose(out, ref, atol=1e-4, rtol=1e-4), (out, ref)
    print("KERNEL_OK")
</pallas_src>

<mosaic_0001>
module attributes {stable_mosaic.version = 11 : i64} {
  func.func @_reward_er_kernel(%arg0: i32, %arg1: memref<6xf32, #tpu.memory_space<smem>>, %arg2: memref<4x32xf32, #tpu.memory_space<vmem>>, %arg3: memref<12x128xf32, #tpu.memory_space<vmem>>, %arg4: memref<4x128xi32, #tpu.memory_space<vmem>>, %arg5: memref<2x128xf32, #tpu.memory_space<vmem>>) attributes {dimension_semantics = [#tpu.dimension_semantics<parallel>], iteration_bounds = array<i64: 1>, scalar_prefetch = 0 : i64, scratch_operands = 0 : i64, tpu.core_type = #tpu.core_type<tc>, window_params = [{transform_indices = @transform_0, window_bounds = array<i64: 6>}, {pipeline_mode = #tpu.pipeline_mode<synchronous>, transform_indices = @transform_1, window_bounds = array<i64: 4, 32>}, {transform_indices = @transform_2, window_bounds = array<i64: 12, 128>}, {transform_indices = @transform_3, window_bounds = array<i64: 4, 128>}, {transform_indices = @transform_4, window_bounds = array<i64: 2, 128>}]} {
    %c0 = arith.constant 0 : index
    %0 = memref.load %arg1[%c0] : memref<6xf32, #tpu.memory_space<smem>>
    %c1 = arith.constant 1 : index
    %1 = memref.load %arg1[%c1] : memref<6xf32, #tpu.memory_space<smem>>
    %c2 = arith.constant 2 : index
    %2 = memref.load %arg1[%c2] : memref<6xf32, #tpu.memory_space<smem>>
    %c3 = arith.constant 3 : index
    %3 = memref.load %arg1[%c3] : memref<6xf32, #tpu.memory_space<smem>>
    %c4 = arith.constant 4 : index
    %4 = memref.load %arg1[%c4] : memref<6xf32, #tpu.memory_space<smem>>
    %c5 = arith.constant 5 : index
    %5 = memref.load %arg1[%c5] : memref<6xf32, #tpu.memory_space<smem>>
    %c0_0 = arith.constant 0 : index
    %c0_1 = arith.constant 0 : index
    %6 = vector.load %arg3[%c0_0, %c0_1] : memref<12x128xf32, #tpu.memory_space<vmem>>, vector<1x128xf32>
    %7 = vector.broadcast %0 : f32 to vector<1x128xf32>
    %8 = arith.mulf %6, %7 : vector<1x128xf32>
    %c1_2 = arith.constant 1 : index
    %c0_3 = arith.constant 0 : index
    %9 = vector.load %arg3[%c1_2, %c0_3] : memref<12x128xf32, #tpu.memory_space<vmem>>, vector<1x128xf32>
    %10 = vector.broadcast %1 : f32 to vector<1x128xf32>
    %11 = arith.mulf %9, %10 : vector<1x128xf32>
    %12 = arith.addf %8, %11 : vector<1x128xf32>
    %c2_4 = arith.constant 2 : index
    %c0_5 = arith.constant 0 : index
    %13 = vector.load %arg3[%c2_4, %c0_5] : memref<12x128xf32, #tpu.memory_space<vmem>>, vector<1x128xf32>
    %14 = vector.broadcast %2 : f32 to vector<1x128xf32>
    %15 = arith.mulf %13, %14 : vector<1x128xf32>
    %16 = arith.addf %12, %15 : vector<1x128xf32>
    %c3_6 = arith.constant 3 : index
    %c0_7 = arith.constant 0 : index
    %17 = vector.load %arg3[%c3_6, %c0_7] : memref<12x128xf32, #tpu.memory_space<vmem>>, vector<1x128xf32>
    %18 = vector.broadcast %3 : f32 to vector<1x128xf32>
    %19 = arith.mulf %17, %18 : vector<1x128xf32>
    %20 = arith.addf %16, %19 : vector<1x128xf32>
    %c4_8 = arith.constant 4 : index
    %c0_9 = arith.constant 0 : index
    %21 = vector.load %arg3[%c4_8, %c0_9] : memref<12x128xf32, #tpu.memory_space<vmem>>, vector<1x128xf32>
    %22 = vector.broadcast %4 : f32 to vector<1x128xf32>
    %23 = arith.mulf %21, %22 : vector<1x128xf32>
    %24 = arith.addf %20, %23 : vector<1x128xf32>
    %c5_10 = arith.constant 5 : index
    %c0_11 = arith.constant 0 : index
    %25 = vector.load %arg3[%c5_10, %c0_11] : memref<12x128xf32, #tpu.memory_space<vmem>>, vector<1x128xf32>
    %26 = vector.broadcast %5 : f32 to vector<1x128xf32>
    %27 = arith.mulf %25, %26 : vector<1x128xf32>
    %28 = arith.addf %24, %27 : vector<1x128xf32>
    %c6 = arith.constant 6 : index
    %c0_12 = arith.constant 0 : index
    %29 = vector.load %arg3[%c6, %c0_12] : memref<12x128xf32, #tpu.memory_space<vmem>>, vector<1x128xf32>
    %30 = vector.broadcast %0 : f32 to vector<1x128xf32>
    %31 = arith.mulf %29, %30 : vector<1x128xf32>
    %c7 = arith.constant 7 : index
    %c0_13 = arith.constant 0 : index
    %32 = vector.load %arg3[%c7, %c0_13] : memref<12x128xf32, #tpu.memory_space<vmem>>, vector<1x128xf32>
    %33 = vector.broadcast %1 : f32 to vector<1x128xf32>
    %34 = arith.mulf %32, %33 : vector<1x128xf32>
    %35 = arith.addf %31, %34 : vector<1x128xf32>
    %c8 = arith.constant 8 : index
    %c0_14 = arith.constant 0 : index
    %36 = vector.load %arg3[%c8, %c0_14] : memref<12x128xf32, #tpu.memory_space<vmem>>, vector<1x128xf32>
    %37 = vector.broadcast %2 : f32 to vector<1x128xf32>
    %38 = arith.mulf %36, %37 : vector<1x128xf32>
    %39 = arith.addf %35, %38 : vector<1x128xf32>
    %c9 = arith.constant 9 : index
    %c0_15 = arith.constant 0 : index
    %40 = vector.load %arg3[%c9, %c0_15] : memref<12x128xf32, #tpu.memory_space<vmem>>, vector<1x128xf32>
    %41 = vector.broadcast %3 : f32 to vector<1x128xf32>
    %42 = arith.mulf %40, %41 : vector<1x128xf32>
    %43 = arith.addf %39, %42 : vector<1x128xf32>
    %c10 = arith.constant 10 : index
    %c0_16 = arith.constant 0 : index
    %44 = vector.load %arg3[%c10, %c0_16] : memref<12x128xf32, #tpu.memory_space<vmem>>, vector<1x128xf32>
    %45 = vector.broadcast %4 : f32 to vector<1x128xf32>
    %46 = arith.mulf %44, %45 : vector<1x128xf32>
    %47 = arith.addf %43, %46 : vector<1x128xf32>
    %c11 = arith.constant 11 : index
    %c0_17 = arith.constant 0 : index
    %48 = vector.load %arg3[%c11, %c0_17] : memref<12x128xf32, #tpu.memory_space<vmem>>, vector<1x128xf32>
    %49 = vector.broadcast %5 : f32 to vector<1x128xf32>
    %50 = arith.mulf %48, %49 : vector<1x128xf32>
    %51 = arith.addf %47, %50 : vector<1x128xf32>
    %c0_18 = arith.constant 0 : index
    %c0_19 = arith.constant 0 : index
    %52 = vector.load %arg2[%c0_18, %c0_19] : memref<4x32xf32, #tpu.memory_space<vmem>>, vector<4x32xf32>
    %53 = tpu.iota {dimensions = array<i32: 0>} : vector<32x128xi32>
    %c0_20 = arith.constant 0 : index
    %c0_21 = arith.constant 0 : index
    %54 = vector.load %arg4[%c0_20, %c0_21] : memref<4x128xi32, #tpu.memory_space<vmem>>, vector<1x128xi32>
    %55 = vector.broadcast %54 : vector<1x128xi32> to vector<32x128xi32>
    %56 = arith.cmpi eq, %53, %55 : vector<32x128xi32>
    %57 = arith.extui %56 : vector<32x128xi1> to vector<32x128xi32>
    %58 = arith.sitofp %57 : vector<32x128xi32> to vector<32x128xf32>
    %cst = arith.constant dense<0.000000e+00> : vector<4x128xf32>
    %59 = tpu.matmul %52, %58, %cst {dimension_numbers = #tpu.dot_dimension_numbers<[1], [0], [0], [1], [0, 0, 1, 1], [], []>} : vector<4x32xf32>, vector<32x128xf32>, vector<4x128xf32> -> vector<4x128xf32>
    %cst_22 = arith.constant 1.000000e+03 : f32
    %60 = vector.broadcast %cst_22 : f32 to vector<4x128xf32>
    %61 = arith.mulf %59, %60 : vector<4x128xf32>
    %cst_23 = arith.constant dense<0xFF800000> : vector<128xf32>
    %62 = vector.multi_reduction <maximumf>, %61, %cst_23 [0] : vector<4x128xf32> to vector<128xf32>
    %63 = vector.shape_cast %62 : vector<128xf32> to vector<1x128xf32>
    %64 = vector.broadcast %63 : vector<1x128xf32> to vector<4x128xf32>
    %65 = arith.subf %61, %64 : vector<4x128xf32>
    %66 = math.exp %65 : vector<4x128xf32>
    %cst_24 = arith.constant dense<0.000000e+00> : vector<128xf32>
    %67 = vector.multi_reduction <add>, %66, %cst_24 [0] : vector<4x128xf32> to vector<128xf32>
    %68 = vector.shape_cast %67 : vector<128xf32> to vector<1x128xf32>
    %69 = arith.mulf %66, %59 : vector<4x128xf32>
    %cst_25 = arith.constant dense<0.000000e+00> : vector<128xf32>
    %70 = vector.multi_reduction <add>, %69, %cst_25 [0] : vector<4x128xf32> to vector<128xf32>
    %71 = vector.shape_cast %70 : vector<128xf32> to vector<1x128xf32>
    %72 = tpu.reciprocal %68 {approx = true} : vector<1x128xf32> -> vector<1x128xf32>
    %73 = arith.mulf %68, %72 : vector<1x128xf32>
    %cst_26 = arith.constant 2.000000e+00 : f32
    %74 = vector.broadcast %cst_26 : f32 to vector<1x128xf32>
    %75 = arith.subf %74, %73 : vector<1x128xf32>
    %76 = arith.mulf %72, %75 : vector<1x128xf32>
    %77 = arith.mulf %71, %76 : vector<1x128xf32>
    %c1_27 = arith.constant 1 : index
    %c0_28 = arith.constant 0 : index
    %78 = vector.load %arg4[%c1_27, %c0_28] : memref<4x128xi32, #tpu.memory_space<vmem>>, vector<1x128xi32>
    %79 = vector.broadcast %78 : vector<1x128xi32> to vector<32x128xi32>
    %80 = arith.cmpi eq, %53, %79 : vector<32x128xi32>
    %81 = arith.extui %80 : vector<32x128xi1> to vector<32x128xi32>
    %82 = arith.sitofp %81 : vector<32x128xi32> to vector<32x128xf32>
    %cst_29 = arith.constant dense<0.000000e+00> : vector<4x128xf32>
    %83 = tpu.matmul %52, %82, %cst_29 {dimension_numbers = #tpu.dot_dimension_numbers<[1], [0], [0], [1], [0, 0, 1, 1], [], []>} : vector<4x32xf32>, vector<32x128xf32>, vector<4x128xf32> -> vector<4x128xf32>
    %cst_30 = arith.constant 1.000000e+03 : f32
    %84 = vector.broadcast %cst_30 : f32 to vector<4x128xf32>
    %85 = arith.mulf %83, %84 : vector<4x128xf32>
    %cst_31 = arith.constant dense<0xFF800000> : vector<128xf32>
    %86 = vector.multi_reduction <maximumf>, %85, %cst_31 [0] : vector<4x128xf32> to vector<128xf32>
    %87 = vector.shape_cast %86 : vector<128xf32> to vector<1x128xf32>
    %88 = vector.broadcast %87 : vector<1x128xf32> to vector<4x128xf32>
    %89 = arith.subf %85, %88 : vector<4x128xf32>
    %90 = math.exp %89 : vector<4x128xf32>
    %cst_32 = arith.constant dense<0.000000e+00> : vector<128xf32>
    %91 = vector.multi_reduction <add>, %90, %cst_32 [0] : vector<4x128xf32> to vector<128xf32>
    %92 = vector.shape_cast %91 : vector<128xf32> to vector<1x128xf32>
    %93 = arith.mulf %90, %83 : vector<4x128xf32>
    %cst_33 = arith.constant dense<0.000000e+00> : vector<128xf32>
    %94 = vector.multi_reduction <add>, %93, %cst_33 [0] : vector<4x128xf32> to vector<128xf32>
    %95 = vector.shape_cast %94 : vector<128xf32> to vector<1x128xf32>
    %96 = tpu.reciprocal %92 {approx = true} : vector<1x128xf32> -> vector<1x128xf32>
    %97 = arith.mulf %92, %96 : vector<1x128xf32>
    %cst_34 = arith.constant 2.000000e+00 : f32
    %98 = vector.broadcast %cst_34 : f32 to vector<1x128xf32>
    %99 = arith.subf %98, %97 : vector<1x128xf32>
    %100 = arith.mulf %96, %99 : vector<1x128xf32>
    %101 = arith.mulf %95, %100 : vector<1x128xf32>
    %c2_35 = arith.constant 2 : index
    %c0_36 = arith.constant 0 : index
    %102 = vector.load %arg4[%c2_35, %c0_36] : memref<4x128xi32, #tpu.memory_space<vmem>>, vector<1x128xi32>
    %103 = vector.broadcast %102 : vector<1x128xi32> to vector<32x128xi32>
    %104 = arith.cmpi eq, %53, %103 : vector<32x128xi32>
    %105 = arith.extui %104 : vector<32x128xi1> to vector<32x128xi32>
    %106 = arith.sitofp %105 : vector<32x128xi32> to vector<32x128xf32>
    %cst_37 = arith.constant dense<0.000000e+00> : vector<4x128xf32>
    %107 = tpu.matmul %52, %106, %cst_37 {dimension_numbers = #tpu.dot_dimension_numbers<[1], [0], [0], [1], [0, 0, 1, 1], [], []>} : vector<4x32xf32>, vector<32x128xf32>, vector<4x128xf32> -> vector<4x128xf32>
    %cst_38 = arith.constant 1.000000e+03 : f32
    %108 = vector.broadcast %cst_38 : f32 to vector<4x128xf32>
    %109 = arith.mulf %107, %108 : vector<4x128xf32>
    %cst_39 = arith.constant dense<0xFF800000> : vector<128xf32>
    %110 = vector.multi_reduction <maximumf>, %109, %cst_39 [0] : vector<4x128xf32> to vector<128xf32>
    %111 = vector.shape_cast %110 : vector<128xf32> to vector<1x128xf32>
    %112 = vector.broadcast %111 : vector<1x128xf32> to vector<4x128xf32>
    %113 = arith.subf %109, %112 : vector<4x128xf32>
    %114 = math.exp %113 : vector<4x128xf32>
    %cst_40 = arith.constant dense<0.000000e+00> : vector<128xf32>
    %115 = vector.multi_reduction <add>, %114, %cst_40 [0] : vector<4x128xf32> to vector<128xf32>
    %116 = vector.shape_cast %115 : vector<128xf32> to vector<1x128xf32>
    %117 = arith.mulf %114, %107 : vector<4x128xf32>
    %cst_41 = arith.constant dense<0.000000e+00> : vector<128xf32>
    %118 = vector.multi_reduction <add>, %117, %cst_41 [0] : vector<4x128xf32> to vector<128xf32>
    %119 = vector.shape_cast %118 : vector<128xf32> to vector<1x128xf32>
    %120 = tpu.reciprocal %116 {approx = true} : vector<1x128xf32> -> vector<1x128xf32>
    %121 = arith.mulf %116, %120 : vector<1x128xf32>
    %cst_42 = arith.constant 2.000000e+00 : f32
    %122 = vector.broadcast %cst_42 : f32 to vector<1x128xf32>
    %123 = arith.subf %122, %121 : vector<1x128xf32>
    %124 = arith.mulf %120, %123 : vector<1x128xf32>
    %125 = arith.mulf %119, %124 : vector<1x128xf32>
    %c3_43 = arith.constant 3 : index
    %c0_44 = arith.constant 0 : index
    %126 = vector.load %arg4[%c3_43, %c0_44] : memref<4x128xi32, #tpu.memory_space<vmem>>, vector<1x128xi32>
    %127 = vector.broadcast %126 : vector<1x128xi32> to vector<32x128xi32>
    %128 = arith.cmpi eq, %53, %127 : vector<32x128xi32>
    %129 = arith.extui %128 : vector<32x128xi1> to vector<32x128xi32>
    %130 = arith.sitofp %129 : vector<32x128xi32> to vector<32x128xf32>
    %cst_45 = arith.constant dense<0.000000e+00> : vector<4x128xf32>
    %131 = tpu.matmul %52, %130, %cst_45 {dimension_numbers = #tpu.dot_dimension_numbers<[1], [0], [0], [1], [0, 0, 1, 1], [], []>} : vector<4x32xf32>, vector<32x128xf32>, vector<4x128xf32> -> vector<4x128xf32>
    %cst_46 = arith.constant 1.000000e+03 : f32
    %132 = vector.broadcast %cst_46 : f32 to vector<4x128xf32>
    %133 = arith.mulf %131, %132 : vector<4x128xf32>
    %cst_47 = arith.constant dense<0xFF800000> : vector<128xf32>
    %134 = vector.multi_reduction <maximumf>, %133, %cst_47 [0] : vector<4x128xf32> to vector<128xf32>
    %135 = vector.shape_cast %134 : vector<128xf32> to vector<1x128xf32>
    %136 = vector.broadcast %135 : vector<1x128xf32> to vector<4x128xf32>
    %137 = arith.subf %133, %136 : vector<4x128xf32>
    %138 = math.exp %137 : vector<4x128xf32>
    %cst_48 = arith.constant dense<0.000000e+00> : vector<128xf32>
    %139 = vector.multi_reduction <add>, %138, %cst_48 [0] : vector<4x128xf32> to vector<128xf32>
    %140 = vector.shape_cast %139 : vector<128xf32> to vector<1x128xf32>
    %141 = arith.mulf %138, %131 : vector<4x128xf32>
    %cst_49 = arith.constant dense<0.000000e+00> : vector<128xf32>
    %142 = vector.multi_reduction <add>, %141, %cst_49 [0] : vector<4x128xf32> to vector<128xf32>
    %143 = vector.shape_cast %142 : vector<128xf32> to vector<1x128xf32>
    %144 = tpu.reciprocal %140 {approx = true} : vector<1x128xf32> -> vector<1x128xf32>
    %145 = arith.mulf %140, %144 : vector<1x128xf32>
    %cst_50 = arith.constant 2.000000e+00 : f32
    %146 = vector.broadcast %cst_50 : f32 to vector<1x128xf32>
    %147 = arith.subf %146, %145 : vector<1x128xf32>
    %148 = arith.mulf %144, %147 : vector<1x128xf32>
    %149 = arith.mulf %143, %148 : vector<1x128xf32>
    %cst_51 = arith.constant 1.500000e+00 : f32
    %150 = vector.broadcast %cst_51 : f32 to vector<1x128xf32>
    %151 = arith.mulf %150, %28 : vector<1x128xf32>
    %cst_52 = arith.constant 8.000000e-01 : f32
    %152 = vector.broadcast %cst_52 : f32 to vector<1x128xf32>
    %153 = arith.mulf %152, %125 : vector<1x128xf32>
    %154 = arith.addf %151, %153 : vector<1x128xf32>
    %cst_53 = arith.constant 1.200000e+00 : f32
    %155 = vector.broadcast %cst_53 : f32 to vector<1x128xf32>
    %156 = arith.mulf %155, %77 : vector<1x128xf32>
    %157 = arith.subf %154, %156 : vector<1x128xf32>
    %cst_54 = arith.constant 1.500000e+00 : f32
    %158 = vector.broadcast %cst_54 : f32 to vector<1x128xf32>
    %159 = arith.mulf %158, %51 : vector<1x128xf32>
    %cst_55 = arith.constant 8.000000e-01 : f32
    %160 = vector.broadcast %cst_55 : f32 to vector<1x128xf32>
    %161 = arith.mulf %160, %149 : vector<1x128xf32>
    %162 = arith.addf %159, %161 : vector<1x128xf32>
    %cst_56 = arith.constant 1.200000e+00 : f32
    %163 = vector.broadcast %cst_56 : f32 to vector<1x128xf32>
    %164 = arith.mulf %163, %101 : vector<1x128xf32>
    %165 = arith.subf %162, %164 : vector<1x128xf32>
    %166 = arith.subf %157, %165 : vector<1x128xf32>
    %167 = arith.negf %166 : vector<1x128xf32>
    %168 = math.exp %167 : vector<1x128xf32>
    %cst_57 = arith.constant 1.000000e+00 : f32
    %169 = vector.broadcast %cst_57 : f32 to vector<1x128xf32>
    %170 = arith.addf %169, %168 : vector<1x128xf32>
    %171 = arith.divf %169, %170 : vector<1x128xf32>
    %cst_58 = arith.constant 1.000000e+00 : f32
    %172 = vector.broadcast %cst_58 : f32 to vector<1x128xf32>
    %173 = arith.subf %172, %171 : vector<1x128xf32>
    %174 = tpu.concatenate %171, %173 in 0 : vector<1x128xf32>, vector<1x128xf32> -> vector<2x128xf32>
    %c0_59 = arith.constant 0 : index
    %c0_60 = arith.constant 0 : index
    %175 = vector.load %arg5[%c0_59, %c0_60] : memref<2x128xf32, #tpu.memory_space<vmem>>, vector<2x128xf32>
    tpu.vector_store %arg5[%c0_59, %c0_60], %174 {strides = array<i32>} : memref<2x128xf32, #tpu.memory_space<vmem>>, vector<2x128xf32>,
    return
  }
  func.func @transform_0(%arg0: i32) -> i32 {
    %c0_i32 = arith.constant 0 : i32
    %c0_i32_0 = arith.constant 0 : i32
    return %c0_i32 : i32
  }
  func.func @transform_1(%arg0: i32) -> (i32, i32) {
    %c0_i32 = arith.constant 0 : i32
    %c0_i32_0 = arith.constant 0 : i32
    %c0_i32_1 = arith.constant 0 : i32
    return %c0_i32, %c0_i32_0 : i32, i32
  }
  func.func @transform_2(%arg0: i32) -> (i32, i32) {
    %c0_i32 = arith.constant 0 : i32
    %c0_i32_0 = arith.constant 0 : i32
    return %c0_i32, %arg0 : i32, i32
  }
  func.func @transform_3(%arg0: i32) -> (i32, i32) {
    %c0_i32 = arith.constant 0 : i32
    %c0_i32_0 = arith.constant 0 : i32
    return %c0_i32, %arg0 : i32, i32
  }
  func.func @transform_4(%arg0: i32) -> (i32, i32) {
    %c0_i32 = arith.constant 0 : i32
    %c0_i32_0 = arith.constant 0 : i32
    return %c0_i32, %arg0 : i32, i32
  }
}

</mosaic_0001>

<bundles_post_ra>
// kernel: tpu_custom_call.1
= control target key start
LH: loop header
LB: loop body
LE: loop exit
PB: predicated region body
PF: predicated region fallthrough
CT: control target
= control target key end

     0   :  { %9 = vsyncpa [#allocation5], 0  ;;  %s1022_s0 = inlined_call_operand.hbm [shape: f32[6], index: 0, kind: input, shape index: {}]   ;;  %s1023_s1 = inlined_call_operand.hbm [shape: f32[4,32], index: 1, kind: input, shape index: {}]   ;;  %s1024_s2 = inlined_call_operand.hbm [shape: f32[12,128], index: 2, kind: input, shape index: {}]   ;;  %s1025_s3 = inlined_call_operand.vmem [shape: s32[4,128], index: 3, kind: input, shape index: {}]   ;;  %s1026_s4 = inlined_call_operand.hbm [shape: f32[2,128], index: 4, kind: output, shape index: {}]  }
   0x1   :  { %10 = vsyncpa [#allocation3], 0 }
   0x2   :  { %11 = vsyncpa [#allocation8], 0 }
   0x3   :  { %12 = vsyncpa [#allocation4], 0  ;;  %s789_s17 = scalar_lea.hbm %s1022_s0, 16 }
   0x4   :  { %p790_p0 = scmp.ne.s32.totalorder %s1022_s0, %s789_s17  ;;  %p793_p1 = scmp.lt.u32.totalorder %s789_s17, %s1022_s0 }
   0x6   :  { %p795_p2 = pnand %p793_p1, %p790_p0 }
   0x8   :  { %798 = shalt.err (!%p795_p2)
}
   0x9   :  { %s873_s22 = smov [#allocation2]   ;;  %s874_s25 = smov [#allocation6]  }
   0xa   :  { %20 = dma.hbm_to_smem %s1022_s0, 16, %s873_s22, [#allocation5]  }
   0xb   :  { %s27_s26 = sshll.u32 %s874_s25, 4  ;;  %s875_s27 = smov [#allocation7]   ;;  %s28_s26 = int_to_ptr.vmem [resolvable:$true] %s27_s26 }
   0xc   :  { %s36_s28 = sshll.u32 %s875_s27, 4  ;;  %s799_s5 = scalar_lea.hbm %s1023_s1, 64  ;;  %s37_s28 = int_to_ptr.vmem [resolvable:$true] %s36_s28 }
   0xd   :  { %p800_p3 = scmp.ne.s32.totalorder %s1023_s1, %s799_s5  ;;  %p803_p4 = scmp.lt.u32.totalorder %s799_s5, %s1023_s1 }
   0xf   :  { %p805_p5 = pnand %p803_p4, %p800_p3 }
  0x11   :  { %808 = shalt.err (!%p805_p5)
}
  0x12   :  { %s809_s0 = scalar_lea.vmem %s28_s26, 64  ;;  %p814_p7 = scmp.lt.s32.totalorder %s28_s26, %s28_s26 }
  0x13   :  { %p810_p6 = scmp.ne.s32.totalorder %s28_s26, %s809_s0  ;;  %p815_p8 = scmp.lt.s32.totalorder %s809_s0, %s809_s0 }
  0x15   :  { %p816_p9 = por %p815_p8, %p814_p7 }
  0x17   :  { %p817_p10 = pnand %p816_p9, %p810_p6 }
  0x19   :  { %820 = shalt.err (!%p817_p10)
}
  0x1a   :  { %30 = dma.hbm_to_vmem [thread:$0]  %s1023_s1, 64, %s28_s26, [#allocation3]  }
  0x1b   :  { %s821_s14 = scalar_lea.hbm %s1024_s2, 256 }
  0x1c   :  { %p822_p11 = scmp.ne.s32.totalorder %s1024_s2, %s821_s14  ;;  %p825_p12 = scmp.lt.u32.totalorder %s821_s14, %s1024_s2 }
  0x1e   :  { %p827_p13 = pnand %p825_p12, %p822_p11 }
  0x20   :  { %830 = shalt.err (!%p827_p13)
}
  0x21   :  { %s831_s19 = scalar_lea.vmem %s37_s28, 256  ;;  %p836_p1 = scmp.lt.s32.totalorder %s37_s28, %s37_s28 }
  0x22   :  { %p832_p0 = scmp.ne.s32.totalorder %s37_s28, %s831_s19  ;;  %p837_p2 = scmp.lt.s32.totalorder %s831_s19, %s831_s19 }
  0x24   :  { %p838_p3 = por %p837_p2, %p836_p1 }
  0x26   :  { %p839_p4 = pnand %p838_p3, %p832_p0 }
  0x28   :  { %842 = shalt.err (!%p839_p4)
}
  0x29   :  { %s876_s1 = smov 128   ;;  %s877_s20 = smov 8  }
  0x2a   :  { %42 = dma.hbm_to_vmem [thread:$0]  %s1024_s2, 256, %s37_s28, [#allocation8], %s876_s1, %s876_s1, %s877_s20  }
  0x2b   :  { %865 = dma.done.wait [#allocation5], 16  }
  0x2c   :  { %866 = vsyncadd [#allocation5], 4294967280 }
  0x2d   :  { %867 = dma.done.wait [#allocation3], 64  }
  0x2e   :  { %868 = vsyncadd [#allocation3], 4294967232 }
  0x2f   :  { %869 = dma.done.wait [#allocation8], 256  }
  0x30   :  { %870 = vsyncadd [#allocation8], 4294967040 }
  0x31   :  { %54 = sfence }
  0x32   :  { %v102_v0 = vlaneseq  ;;  %v878_v1 = vmov 0.0|0.0   ;;  %v630_v2 = vld [vmem:[%s1025_s3] ss:$0 sm:$0xff]  ;;  %v640_v4 = vld [vmem:[%s1025_s3 + $0x1] ss:$0 sm:$0xff]  ;;  %vm1027_vm0 = vmmov 0  }
  0x33   :  { %735 = vmatprep.subr.bf16.mxu0 %v878_v1  ;;  %741 = vmatprep.subr.bf16.mxu1 %v878_v1  ;;  %v880_v5 = vmov 0.0   ;;  %v650_v9 = vld [vmem:[%s1025_s3 + $0x2] ss:$0 sm:$0xff]  ;;  %v881_v10 = vmov 1.0|1.0   ;;  %s983_s30 = sld [smem:[#allocation2 + $0x1]] }
  0x34   :  { %v103_v3 = vshrl.u32 %v102_v0, 7  ;;  %699 = vmatprep.mubr.msk.f32.mxu0 %vm1027_vm0, %v880_v5  ;;  %710 = vmatprep.mubr.msk.f32.mxu1 %vm1027_vm0, %v880_v5  ;;  %v660_v11 = vld [vmem:[%s1025_s3 + $0x3] ss:$0 sm:$0xff]  ;;  %v101_v12 = vld [vmem:[#allocation6] sm:$0xf]  ;;  %s980_s3 = sld [smem:[#allocation2]] }
  0x35   :  { %s986_s5 = sld [smem:[#allocation2 + $0x2]]  ;;  %s995_s6 = sld [smem:[#allocation2 + $0x3]] }
  0x36   :  { %v104_v6 = vadd.s32 8, %v103_v3  ;;  %vm112_vm1 = vcmp.eq.s32.totalorder %v103_v3, %v630_v2  ;;  %v105_v7 = vadd.s32 16, %v103_v3  ;;  %vm235_vm2 = vcmp.eq.s32.totalorder %v103_v3, %v640_v4  ;;  %s1002_s7 = sld [smem:[#allocation2 + $0x4]]  ;;  %s1005_s8 = sld [smem:[#allocation2 + $0x5]] }
  0x37   :  { %v106_v8 = vadd.s32 24, %v103_v3  ;;  %vm353_vm13 = vcmp.eq.s32.totalorder %v103_v3, %v650_v9  ;;  %vm471_vm15 = vcmp.eq.s32.totalorder %v103_v3, %v660_v11  ;;  %s882_s9 = smov [#allocation9]  }
  0x38   :  { %vm113_vm3 = vcmp.eq.s32.totalorder %v104_v6, %v630_v2  ;;  %vm236_vm4 = vcmp.eq.s32.totalorder %v104_v6, %v640_v4  ;;  %vm114_vm5 = vcmp.eq.s32.totalorder %v105_v7, %v630_v2  ;;  %vm237_vm8 = vcmp.eq.s32.totalorder %v105_v7, %v640_v4  ;;  %s614_s0 = sshll.u32 %s882_s9, 4  ;;  %s615_s0 = int_to_ptr.vmem [resolvable:$true] %s614_s0 }
  0x39   :  { %vm736_vm6 = vmpackc.low %vm113_vm3, %vm112_vm1  ;;  %vm115_vm7 = vcmp.eq.s32.totalorder %v106_v8, %v630_v2  ;;  %vm238_vm9 = vcmp.eq.s32.totalorder %v106_v8, %v640_v4  ;;  %vm354_vm14 = vcmp.eq.s32.totalorder %v104_v6, %v650_v9  ;;  %vm472_vm1 = vcmp.eq.s32.totalorder %v104_v6, %v660_v11  ;;  %s843_s10 = scalar_lea.vmem %s615_s0, 32  ;;  %p848_p6 = scmp.lt.s32.totalorder %s615_s0, %s615_s0 }
  0x3a   :  { %737 = vmatpush3.bf16.msk.msra.mxu0 %vm736_vm6, %v881_v10  ;;  %vm742_vm10 = vmpackc.low %vm236_vm4, %vm235_vm2  ;;  %vm124_vm3 = vcmask 261120   ;;  %vm355_vm4 = vcmp.eq.s32.totalorder %v105_v7, %v650_v9  ;;  %vm356_vm0 = vcmp.eq.s32.totalorder %v106_v8, %v650_v9  ;;  %v62_v9 = vstv %s980_s3  ;;  %p844_p5 = scmp.ne.s32.totalorder %s615_s0, %s843_s10  ;;  %p849_p7 = scmp.lt.s32.totalorder %s843_s10, %s843_s10 }
  0x3b   :  { %743 = vmatpush3.bf16.msk.msra.mxu1 %vm742_vm10, %v881_v10  ;;  %738 = vmatprep.subr.bf16.mxu0 %v878_v1  ;;  %vm739_vm11 = vmpackc.low %vm115_vm7, %vm114_vm5  ;;  %vm473_vm10 = vcmp.eq.s32.totalorder %v105_v7, %v660_v11  ;;  %vm474_vm5 = vcmp.eq.s32.totalorder %v106_v8, %v660_v11 }
  0x3c   :  { %744 = vmatprep.subr.bf16.mxu1 %v878_v1  ;;  %vm745_vm12 = vmpackc.low %vm238_vm9, %vm237_vm8  ;;  %vm1029_vm9 = vmmov 0   ;;  %p850_p8 = por %p849_p7, %p848_p6 }
  0x3d   :  { %vm748_vm6 = vmpackc.low %vm354_vm14, %vm353_vm13 }
  0x3e   :  { %740 = vmatpush3.bf16.msk.msra.mxu0 %vm739_vm11, %v881_v10  ;;  %vm754_vm2 = vmpackc.low %vm472_vm1, %vm471_vm15  ;;  %vm199_vm11 = vcmask 1043456   ;;  %p851_p9 = pnand %p850_p8, %p844_p5 }
  0x3f   :  { %746 = vmatpush3.bf16.msk.msra.mxu1 %vm745_vm12, %v881_v10  ;;  %747 = vmatprep.subr.bf16.mxu0 %v878_v1  ;;  %vm751_vm7 = vmpackc.low %vm356_vm0, %vm355_vm4  ;;  %vm605_vm0 = vcmask 1040384  }
  0x40   :  { %753 = vmatprep.subr.bf16.mxu1 %v878_v1  ;;  %vm757_vm8 = vmpackc.low %vm474_vm5, %vm473_vm10 }
  0x41   :  { %700 = vmatmul.mubr.msk.f32.vlgmr.msra.gmra.mrb[0].mxu0 %vm124_vm3, %v101_v12 }
  0x42   :  { %711 = vmatmul.mubr.msk.f32.vlgmr.msra.gmra.mrb[0].mxu1 %vm124_vm3, %v101_v12  ;;  %749 = vmatpush3.bf16.msk.msra.mxu0 %vm748_vm6, %v881_v10 }
  0x43   :  { %755 = vmatpush3.bf16.msk.msra.mxu1 %vm754_vm2, %v881_v10  ;;  %750 = vmatprep.subr.bf16.mxu0 %v878_v1 }
  0x44   :  { %756 = vmatprep.subr.bf16.mxu1 %v878_v1  ;;  %721 = vmatprep.mubr.msk.f32.mxu0 %vm1029_vm9, %v880_v5 }
  0x45   :  { %732 = vmatprep.mubr.msk.f32.mxu1 %vm1029_vm9, %v880_v5 }
  0x46   :  { %752 = vmatpush3.bf16.msk.msra.mxu0 %vm751_vm7, %v881_v10 }
  0x47   :  { %758 = vmatpush3.bf16.msk.msra.mxu1 %vm757_vm8, %v881_v10 }
  0x49   :  { %722 = vmatmul.mubr.msk.f32.vlgmr.msra.gmra.mrb[2].mxu0 %vm124_vm3, %v101_v12 }
  0x4a   :  { %733 = vmatmul.mubr.msk.f32.vlgmr.msra.gmra.mrb[2].mxu1 %vm124_vm3, %v101_v12 }
 0x114   :  { %v964_v13 = vpop.f32.mrb[0].mxu0 }
 0x115   :  { %v198_v14 = vmul.f32 1000.0, %v964_v13  ;;  %v967_v15 = vpop.f32.mrb[0].mxu1  ;;  %v701_v16 = vpop.f32.mrb[1].mxu0 }
 0x116   :  { %v317_v17 = vmul.f32 1000.0, %v967_v15  ;;  %v712_v18 = vpop.f32.mrb[1].mxu1  ;;  %v65_v16 = vstv %s983_s30 }
 0x117   :  { %v200_v19 = vsel %vm199_vm11, %v198_v14, -inf }
 0x118   :  { %v201_v20 = vrot.slane %v200_v19, 4  ;;  %v318_v21 = vsel %vm199_vm11, %v317_v17, -inf }
 0x119   :  { %v319_v22 = vrot.slane %v318_v21, 4 }
 0x11a   :  { %v202_v23 = vmax.f32 %v200_v19, %v201_v20  ;;  %v64_v19 = vld [vmem:[#allocation7 + $0x1] sm:$0x1] }
 0x11b   :  { %v320_v24 = vmax.f32 %v318_v21, %v319_v22 }
 0x11c   :  { %v203_v25 = vrot.slane %v202_v23, 2  ;;  %v972_v26 = vpop.f32.mrb[2].mxu0 }
 0x11d   :  { %v321_v27 = vrot.slane %v320_v24, 2  ;;  %v435_v28 = vmul.f32 1000.0, %v972_v26  ;;  %v975_v29 = vpop.f32.mrb[2].mxu1  ;;  %v723_v30 = vpop.f32.mrb[3].mxu0 }
 0x11e   :  { %v204_v31 = vmax.f32 %v202_v23, %v203_v25  ;;  %v553_v32 = vmul.f32 1000.0, %v975_v29  ;;  %v734_v33 = vpop.f32.mrb[3].mxu1 }
 0x11f   :  { %v322_v34 = vmax.f32 %v320_v24, %v321_v27  ;;  %v436_v35 = vsel %vm199_vm11, %v435_v28, -inf  ;;  %v86_v33 = vld [vmem:[#allocation7 + $0x7] sm:$0x1] }
 0x120   :  { %v205_v36 = vrot.slane %v204_v31, 1  ;;  %v437_v37 = vrot.slane %v436_v35, 4  ;;  %v554_v38 = vsel %vm199_vm11, %v553_v32, -inf }
 0x121   :  { %v323_v39 = vrot.slane %v322_v34, 1  ;;  %v555_v40 = vrot.slane %v554_v38, 4 }
 0x122   :  { %v206_v41 = vmax.f32 %v204_v31, %v205_v36  ;;  %v438_v42 = vmax.f32 %v436_v35, %v437_v37  ;;  %v66_v31 = vmul.f32 %v65_v16, %v64_v19 }
 0x123   :  { %v324_v43 = vmax.f32 %v322_v34, %v323_v39  ;;  %v556_v44 = vmax.f32 %v554_v38, %v555_v40  ;;  %v68_v40 = vld [vmem:[#allocation7 + $0x2] sm:$0x1] }
 0x124   :  { %v207_v45 = vsub.f32 %v198_v14, %v206_v41  ;;  %v439_v46 = vrot.slane %v438_v42, 2  ;;  %v61_v14 = vld [vmem:[#allocation7] sm:$0x1]  ;;  %v69_v41 = vstv %s986_s5 }
 0x125   :  { %v325_v47 = vsub.f32 %v317_v17, %v324_v43  ;;  %v557_v48 = vrot.slane %v556_v44, 2 }
 0x126   :  { %v208_v49 = vmul.f32 1.442695, %v207_v45  ;;  %v440_v50 = vmax.f32 %v438_v42, %v439_v46  ;;  %v89_v46 = vld [vmem:[#allocation7 + $0x8] sm:$0x1] }
 0x127   :  { %v326_v51 = vmul.f32 1.442695, %v325_v47  ;;  %v558_v52 = vmax.f32 %v556_v44, %v557_v48 }
 0x128   :  { %769 = vpow2.f32 %v208_v49  ;;  %v441_v53 = vrot.slane %v440_v50, 1 }
 0x129   :  { %771 = vpow2.f32 %v326_v51  ;;  %v559_v54 = vrot.slane %v558_v52, 1 }
 0x12a   :  { %v442_v55 = vmax.f32 %v440_v50, %v441_v53 }
 0x12b   :  { %v560_v56 = vmax.f32 %v558_v52, %v559_v54  ;;  %v70_v52 = vmul.f32 %v69_v41, %v68_v40  ;;  %v72_v54 = vld [vmem:[#allocation7 + $0x3] sm:$0x1] }
 0x12c   :  { %v443_v57 = vsub.f32 %v435_v28, %v442_v55  ;;  %v73_v55 = vstv %s995_s6 }
 0x12d   :  { %v561_v58 = vsub.f32 %v553_v32, %v560_v56  ;;  %v84_v32 = vld [vmem:[#allocation7 + $0x6] sm:$0x1] }
 0x12e   :  { %v444_v59 = vmul.f32 1.442695, %v443_v57  ;;  %v85_v43 = vmul.f32 %v84_v32, %v62_v9 }
 0x12f   :  { %v562_v60 = vmul.f32 1.442695, %v561_v58  ;;  %v90_v58 = vmul.f32 %v89_v46, %v69_v41 }
 0x130   :  { %773 = vpow2.f32 %v444_v59 }
 0x131   :  { %775 = vpow2.f32 %v562_v60 }
 0x132   :  { %v770_v61 = vpop.eup %769 }
 0x133   :  { %v772_v62 = vpop.eup %771  ;;  %v210_v63 = vsel %vm199_vm11, %v770_v61, 0.0  ;;  %v217_v11 = vmul.f32 %v770_v61, %v964_v13  ;;  %v63_v13 = vmul.f32 %v62_v9, %v61_v14  ;;  %v92_v61 = vld [vmem:[#allocation7 + $0x9] sm:$0x1] }
 0x134   :  { %v211_v0 = vrot.slane %v210_v63, 4  ;;  %v328_v1 = vsel %vm199_vm11, %v772_v62, 0.0  ;;  %v335_v24 = vmul.f32 %v772_v62, %v967_v15 }
 0x135   :  { %v329_v2 = vrot.slane %v328_v1, 4  ;;  %v67_v51 = vadd.f32 %v66_v31, %v63_v13  ;;  %v98_v13 = vld [vmem:[#allocation7 + $0xb] sm:$0x1] }
 0x136   :  { %v212_v3 = vadd.f32 %v211_v0, %v210_v63  ;;  %v336_v37 = vsel %vm199_vm11, %v335_v24, 0.0 }
 0x137   :  { %v330_v4 = vadd.f32 %v329_v2, %v328_v1  ;;  %v337_v48 = vrot.slane %v336_v37, 4  ;;  %v71_v1 = vadd.f32 %v70_v52, %v67_v51  ;;  %v74_v2 = vmul.f32 %v73_v55, %v72_v54 }
 0x138   :  { %v213_v5 = vrot.slane %v212_v3, 2 }
 0x139   :  { %v331_v6 = vrot.slane %v330_v4, 2  ;;  %v338_v63 = vadd.f32 %v337_v48, %v336_v37 }
 0x13a   :  { %v774_v7 = vpop.eup %773  ;;  %v214_v8 = vadd.f32 %v213_v5, %v212_v3  ;;  %v77_v5 = vstv %s1002_s7 }
 0x13b   :  { %v776_v10 = vpop.eup %775  ;;  %v332_v12 = vadd.f32 %v331_v6, %v330_v4  ;;  %v446_v17 = vsel %vm199_vm11, %v774_v7, 0.0  ;;  %v453_v21 = vmul.f32 %v774_v7, %v972_v26  ;;  %v218_v26 = vsel %vm199_vm11, %v217_v11, 0.0  ;;  %v76_v4 = vld [vmem:[#allocation7 + $0x4] sm:$0x1]  ;;  %v95_v11 = vld [vmem:[#allocation7 + $0xa] sm:$0x1] }
 0x13c   :  { %v215_v18 = vrot.slane %v214_v8, 1  ;;  %v447_v20 = vrot.slane %v446_v17, 4  ;;  %v564_v22 = vsel %vm199_vm11, %v776_v10, 0.0  ;;  %v571_v35 = vmul.f32 %v776_v10, %v975_v29 }
 0x13d   :  { %v333_v23 = vrot.slane %v332_v12, 1  ;;  %v565_v25 = vrot.slane %v564_v22, 4  ;;  %v454_v15 = vsel %vm199_vm11, %v453_v21, 0.0  ;;  %v87_v29 = vmul.f32 %v86_v33, %v65_v16 }
 0x13e   :  { %v216_v27 = vadd.f32 %v215_v18, %v214_v8  ;;  %v448_v28 = vadd.f32 %v447_v20, %v446_v17  ;;  %v572_v39 = vsel %vm199_vm11, %v571_v35, 0.0  ;;  %v219_v44 = vrot.slane %v218_v26, 4  ;;  %v80_v20 = vld [vmem:[#allocation7 + $0x5] sm:$0x1] }
 0x13f   :  { %v334_v30 = vadd.f32 %v333_v23, %v332_v12  ;;  %v566_v34 = vadd.f32 %v565_v25, %v564_v22  ;;  %v455_v45 = vrot.slane %v454_v15, 4  ;;  %v573_v50 = vrot.slane %v572_v39, 4 }
 0x140   :  { %777 = vrcp.f32 %v216_v27  ;;  %v449_v36 = vrot.slane %v448_v28, 2  ;;  %v88_v57 = vadd.f32 %v87_v29, %v85_v43  ;;  %v220_v59 = vadd.f32 %v219_v44, %v218_v26 }
 0x141   :  { %779 = vrcp.f32 %v334_v30  ;;  %v567_v38 = vrot.slane %v566_v34, 2  ;;  %v456_v60 = vadd.f32 %v455_v45, %v454_v15  ;;  %v574_v0 = vadd.f32 %v573_v50, %v572_v39 }
 0x142   :  { %v450_v42 = vadd.f32 %v449_v36, %v448_v28  ;;  %v91_v6 = vadd.f32 %v90_v58, %v88_v57  ;;  %v93_v7 = vmul.f32 %v92_v61, %v73_v55  ;;  %v221_v9 = vrot.slane %v220_v59, 2 }
 0x143   :  { %v568_v47 = vadd.f32 %v567_v38, %v566_v34  ;;  %v457_v10 = vrot.slane %v456_v60, 2  ;;  %v339_v12 = vrot.slane %v338_v63, 2  ;;  %v575_v14 = vrot.slane %v574_v0, 2 }
 0x144   :  { %v451_v49 = vrot.slane %v450_v42, 1  ;;  %v75_v17 = vadd.f32 %v74_v2, %v71_v1  ;;  %v78_v18 = vmul.f32 %v77_v5, %v76_v4  ;;  %v81_v21 = vstv %s1005_s8 }
 0x145   :  { %v569_v53 = vrot.slane %v568_v47, 1  ;;  %v94_v22 = vadd.f32 %v93_v7, %v91_v6  ;;  %v96_v23 = vmul.f32 %v95_v11, %v77_v5  ;;  %v222_v24 = vadd.f32 %v221_v9, %v220_v59 }
 0x146   :  { %v452_v56 = vadd.f32 %v451_v49, %v450_v42  ;;  %v458_v25 = vadd.f32 %v457_v10, %v456_v60  ;;  %v340_v28 = vadd.f32 %v339_v12, %v338_v63  ;;  %v576_v31 = vadd.f32 %v575_v14, %v574_v0 }
 0x147   :  { %v570_v62 = vadd.f32 %v569_v53, %v568_v47  ;;  %v79_v33 = vadd.f32 %v78_v18, %v75_v17  ;;  %v82_v34 = vmul.f32 %v81_v21, %v80_v20  ;;  %v97_v36 = vadd.f32 %v96_v23, %v94_v22 }
 0x148   :  { %781 = vrcp.f32 %v452_v56  ;;  %v99_v15 = vmul.f32 %v98_v13, %v81_v21  ;;  %v223_v37 = vrot.slane %v222_v24, 1  ;;  %v459_v38 = vrot.slane %v458_v25, 1 }
 0x149   :  { %783 = vrcp.f32 %v570_v62  ;;  %v341_v39 = vrot.slane %v340_v28, 1  ;;  %v577_v40 = vrot.slane %v576_v31, 1  ;;  %v83_v43 = vadd.f32 %v82_v34, %v79_v33 }
 0x14a   :  { %v778_v3 = vpop.eup %777  ;;  %v100_v45 = vadd.f32 %v99_v15, %v97_v36  ;;  %v224_v47 = vadd.f32 %v223_v37, %v222_v24  ;;  %v460_v48 = vadd.f32 %v459_v38, %v458_v25 }
 0x14b   :  { %v780_v8 = vpop.eup %779  ;;  %v226_v16 = vmul.f32 %v778_v3, %v216_v27  ;;  %v342_v50 = vadd.f32 %v341_v39, %v340_v28  ;;  %v578_v51 = vadd.f32 %v577_v40, %v576_v31  ;;  %v584_v55 = vmul.f32 1.5, %v83_v43 }
 0x14c   :  { %v344_v19 = vmul.f32 %v780_v8, %v334_v30  ;;  %v589_v58 = vmul.f32 1.5, %v100_v45 }
 0x14d   :  { %v227_v32 = vsub.f32 2.0, %v226_v16 }
 0x14e   :  { %v345_v26 = vsub.f32 2.0, %v344_v19 }
 0x14f   :  { %v228_v42 = vmul.f32 %v778_v3, %v227_v32 }
 0x150   :  { %v346_v44 = vmul.f32 %v780_v8, %v345_v26 }
 0x151   :  { %v229_v53 = vmul.f32 %v228_v42, %v224_v47 }
 0x152   :  { %v782_v35 = vpop.eup %781  ;;  %v347_v57 = vmul.f32 %v346_v44, %v342_v50 }
 0x153   :  { %v784_v27 = vpop.eup %783  ;;  %v462_v30 = vmul.f32 %v782_v35, %v452_v56  ;;  %v587_v61 = vmul.f32 1.2, %v229_v53 }
 0x154   :  { %v580_v41 = vmul.f32 %v784_v27, %v570_v62  ;;  %v592_v63 = vmul.f32 1.2, %v347_v57 }
 0x155   :  { %v463_v29 = vsub.f32 2.0, %v462_v30 }
 0x156   :  { %v581_v46 = vsub.f32 2.0, %v580_v41 }
 0x157   :  { %v464_v49 = vmul.f32 %v782_v35, %v463_v29 }
 0x158   :  { %v582_v52 = vmul.f32 %v784_v27, %v581_v46 }
 0x159   :  { %v465_v54 = vmul.f32 %v464_v49, %v460_v48 }
 0x15a   :  { %v583_v56 = vmul.f32 %v582_v52, %v578_v51 }
 0x15b   :  { %v585_v59 = vmul.f32 0.8, %v465_v54 }
 0x15c   :  { %v590_v60 = vmul.f32 0.8, %v583_v56 }
 0x15d   :  { %v586_v62 = vadd.f32 %v585_v59, %v584_v55 }
 0x15e   :  { %v591_v0 = vadd.f32 %v590_v60, %v589_v58 }
 0x15f   :  { %v588_v1 = vsub.f32 %v586_v62, %v587_v61 }
 0x160   :  { %v593_v2 = vsub.f32 %v591_v0, %v592_v63 }
 0x162   :  { %v594_v3 = vsub.f32 %v588_v1, %v593_v2 }
 0x164   :  { %v670_v4 = vmul.f32 -1.442695, %v594_v3 }
 0x166   :  { %785 = vpow2.f32 %v670_v4 }
 0x170   :  { %v786_v5 = vpop.eup %785 }
 0x171   :  { %v598_v6 = vadd.f32 1.0, %v786_v5 }
 0x173   :  { %787 = vrcp.f32 %v598_v6 }
 0x17d   :  { %v788_v7 = vpop.eup %787 }
 0x17e   :  { %v601_v8 = vsub.f32 1.0, %v788_v7 }
 0x180   :  { %v603_v9 = vrot.slane %v601_v8, 7 }
 0x182   :  { %v606_v10 = vsel %vm605_vm0, %v788_v7, %v603_v9 }
 0x183   :  { %607 = vst [vmem:[#allocation9] sm:$0x3] %v606_v10 }
 0x184   :  { %854 = shalt.err (!%p851_p9)
}
 0x185   :  { %s855_s13 = scalar_lea.hbm %s1026_s4, 32 }
 0x186   :  { %p856_p10 = scmp.ne.s32.totalorder %s1026_s4, %s855_s13  ;;  %p859_p11 = scmp.lt.u32.totalorder %s855_s13, %s1026_s4 }
 0x188   :  { %p861_p12 = pnand %p859_p11, %p856_p10 }
 0x18a   :  { %864 = shalt.err (!%p861_p12)
}
 0x18b   :  { %617 = dma.vmem_to_hbm [thread:$0]  %s615_s0, 32, %s1026_s4, [#allocation4]  }
 0x18c   :  { %871 = dma.done.wait [#allocation4], 32  }
 0x18d   :  { %872 = vsyncadd [#allocation4], 4294967264 }
 0x18e   :  { %621 = vsyncpa [#allocation3], 1 }
 0x18f   :  { %622 = vsyncpa [#allocation8], 1 }
 0x190   :  { %623 = vsyncpa [#allocation4], 1 }
 0x191   :  { %624 = vsyncpa [#allocation5], 1 }

</bundles_post_ra>
